<compile_context>
chip_gen: v7x
topology: tpu7x:2x2x1
jax: 0.10.0
libtpu: 0.0.40
codegen_flags: <defaults>
</compile_context>

<pallas_src>
import functools

import jax
import jax.numpy as jnp
from jax.experimental import pallas as pl
from jax.experimental.pallas import tpu as pltpu


def crowd_counter_kernel(w_ref, b_ref, img_ref, gt_den_ref, gt_cls_ref,
                         pred_ref, loss_den_ref, loss_cls_ref,
                         *, cin, cout, tn, tw, n_total, hw_total,
                         ragged_n, ragged_hw):
    """One grid step = (batch block i) x (HW lane block j).

    img_ref:      (tn, Cin,  tw)  VMEM
    gt_*_ref:     (tn, Cout, tw)  VMEM
    pred_ref:     (tn, Cout, tw)  VMEM (lane-dense output slab)
    w_ref:        (Cout*Cin,)     SMEM (scalar prefetch, flattened)
    b_ref:        (Cout,)         SMEM (scalar prefetch)
    loss_*_ref:   (1, 1, 1, 128)  per-block partial loss, broadcast over lanes
    """
    # Channel slabs, upcast once (inputs may arrive as bf16).
    x = [img_ref[:, c, :].astype(jnp.float32) for c in range(cin)]

    # 1x1-conv head == unrolled scalar-weighted VPU FMAs, weights in SMEM.
    # TODO(synk): with a real backbone head (Cin >= ~32) switch this to an MXU
    #             matmul (tn*tw, Cin) @ (Cin, Cout padded to 128) with f32 acc
    #             to keep the VALU slot free (tightest on v7x).
    logits = []
    for o in range(cout):
        acc = x[0] * w_ref[o * cin + 0] + b_ref[o]
        for c in range(1, cin):
            acc = acc + x[c] * w_ref[o * cin + c]
        logits.append(acc)

    # log-softmax over the class axis (torch dim=1), expressed as elementwise
    # ops between the Cout dense (tn, tw) slabs.
    m = logits[0]
    for o in range(1, cout):
        m = jnp.maximum(m, logits[o])
    sez = jnp.exp(logits[0] - m)
    for o in range(1, cout):
        sez = sez + jnp.exp(logits[o] - m)
    lse = m + jnp.log(sez)                      # logsumexp over classes

    # Validity mask for ragged batch / HW edge blocks (loss only -- OOB pred
    # writes are dropped by Pallas automatically).  Traced only when needed.
    mask = None
    if ragged_n:
        row = jax.lax.broadcasted_iota(jnp.int32, (tn, tw), 0)
        mask = (pl.program_id(0) * tn + row) < n_total
    if ragged_hw:
        col = jax.lax.broadcasted_iota(jnp.int32, (tn, tw), 1)
        hw_ok = (pl.program_id(1) * tw + col) < hw_total
        mask = hw_ok if mask is None else (mask & hw_ok)

    den_sum = jnp.zeros((1, 1), jnp.float32)
    cls_sum = jnp.zeros((1, 1), jnp.float32)
    for o in range(cout):
        # softmax prediction without a divide: the exp rides the EUP slot.
        pred_ref[:, o, :] = jnp.exp(logits[o] - lse).astype(pred_ref.dtype)
        nll = lse - logits[o]                   # == -log_softmax(pred_map)[o]
        d = gt_den_ref[:, o, :].astype(jnp.float32) * nll
        c = gt_cls_ref[:, o, :].astype(jnp.float32) * nll
        if mask is not None:
            d = jnp.where(mask, d, 0.0)
            c = jnp.where(mask, c, 0.0)
        den_sum = den_sum + jnp.sum(d, keepdims=True)
        cls_sum = cls_sum + jnp.sum(c, keepdims=True)

    # Per-block partial losses, broadcast across 128 lanes so the store is
    # lane-dense; the final mean happens in the wrapper, so there is no
    # cross-step accumulator and both grid axes stay "parallel".
    loss_den_ref[...] = jnp.broadcast_to(den_sum.reshape(1, 1, 1, 1),
                                         (1, 1, 1, 128))
    loss_cls_ref[...] = jnp.broadcast_to(cls_sum.reshape(1, 1, 1, 1),
                                         (1, 1, 1, 128))


def _choose_tiles(n, cin, cout, hw, budget_bytes):
    """Pick (tn, tw): batch tile and lane-dense HW tile.

    The *double-buffered* f32 working set 2*tn*tw*(Cin+3*Cout)*4 is kept under
    `budget_bytes`.  tw is a multiple of 128 unless it equals the full HW.  At
    least 2 grid steps are produced whenever possible so v7x's two TensorCores
    both get work under "parallel" semantics.
    """
    bytes_per_px = 4 * (cin + 3 * cout)          # img + gt_den + gt_cls + pred

    tn = n
    cap = max(1, budget_bytes // (2 * tn * bytes_per_px))
    tw = min(hw, 8192, cap)                      # >=512 lanes ~85% HBM roofline
    if tw < hw:
        tw = max(128, (tw // 128) * 128)
    # If even a (tn, 128) block busts the budget, shrink the batch tile.
    while tn > 1 and 2 * tn * tw * bytes_per_px > budget_bytes:
        tn = (tn + 1) // 2
    # Never collapse to a single grid step (v7x megacore sharding).
    if tn >= n and tw >= hw:
        if hw >= 256:
            tw = max(128, (((hw + 1) // 2) // 128) * 128)
        elif n >= 2:
            tn = (n + 1) // 2
    return tn, tw


def crowd_counter_forward(img, gt_den, gt_cls, w, b,
                          *, vmem_budget_bytes=16 << 20):
    """img: (N, Cin, H, W); gt_den/gt_cls: (N, Cout, H, W) float soft labels.

    Returns (pred (N, Cout, H, W), loss_cross_entropy_den, loss_cross_entropy_cls),
    matching the 'ours' branch of CrowdCounter.forward.
    """
    N, Cin, H, W = img.shape
    Cout = w.shape[0]
    HW = H * W

    # Native (N, C, H*W) layout: merging the trailing spatial dims is a free
    # metadata reshape -- no HBM transpose/pad round-trips.
    img_f = img.reshape(N, Cin, HW)
    den_f = gt_den.reshape(N, Cout, HW)
    cls_f = gt_cls.reshape(N, Cout, HW)
    w_f = w.reshape(Cout * Cin).astype(jnp.float32)   # flat 1D -> tiny SMEM pad
    b_f = b.reshape(Cout).astype(jnp.float32)

    tn, tw = _choose_tiles(N, Cin, Cout, HW, vmem_budget_bytes)
    g0 = pl.cdiv(N, tn)
    g1 = pl.cdiv(HW, tw)
    ragged_n = (N % tn) != 0
    ragged_hw = (HW % tw) != 0

    # Explicit scoped-VMEM limit from the double-buffered working set
    # (+ headroom), kept well under v7x's 64 MiB physical VMEM.
    block_bytes = 4 * tn * tw * (Cin + 3 * Cout)
    vmem_limit = int(min(max(2 * block_bytes + (4 << 20), 16 << 20), 48 << 20))

    kernel = functools.partial(
        crowd_counter_kernel, cin=Cin, cout=Cout, tn=tn, tw=tw,
        n_total=N, hw_total=HW, ragged_n=ragged_n, ragged_hw=ragged_hw)

    pred_flat, loss_den_p, loss_cls_p = pl.pallas_call(
        kernel,
        out_shape=(jax.ShapeDtypeStruct((N, Cout, HW), img.dtype),
                   jax.ShapeDtypeStruct((g0, g1, 1, 128), jnp.float32),
                   jax.ShapeDtypeStruct((g0, g1, 1, 128), jnp.float32)),
        grid_spec=pltpu.PrefetchScalarGridSpec(
            num_scalar_prefetch=2,                 # w, b -> SMEM scalars
            grid=(g0, g1),
            in_specs=[
                pl.BlockSpec((tn, Cin, tw), lambda i, j, w, b: (i, 0, j)),   # img
                pl.BlockSpec((tn, Cout, tw), lambda i, j, w, b: (i, 0, j)),  # gt_den
                pl.BlockSpec((tn, Cout, tw), lambda i, j, w, b: (i, 0, j)),  # gt_cls
            ],
            out_specs=[
                pl.BlockSpec((tn, Cout, tw), lambda i, j, w, b: (i, 0, j)),  # pred
                pl.BlockSpec((1, 1, 1, 128), lambda i, j, w, b: (i, j, 0, 0)),
                pl.BlockSpec((1, 1, 1, 128), lambda i, j, w, b: (i, j, 0, 0)),
            ]),
        compiler_params=pltpu.CompilerParams(
            dimension_semantics=("parallel", "parallel"),
            vmem_limit_bytes=vmem_limit),
    )(w_f, b_f, img_f, den_f, cls_f)

    inv_count = 1.0 / float(N * HW)               # soft-CE mean over N*H*W
    loss_den = jnp.sum(loss_den_p[..., 0]) * inv_count
    loss_cls = jnp.sum(loss_cls_p[..., 0]) * inv_count
    pred = pred_flat.reshape(N, Cout, H, W)       # free reshape, no transpose
    return pred, loss_den, loss_cls


if __name__ == "__main__":
    N, Cin, H, W, Cout = 2, 4, 16, 16, 2

    key = jax.random.PRNGKey(0)
    k_img, k_cls, k_den, k_w, k_b = jax.random.split(key, 5)

    img = jax.random.normal(k_img, (N, Cin, H, W), jnp.float32)
    # soft per-pixel labels over the class axis (as the 'ours' method expects)
    gt_cls = jax.nn.softmax(jax.random.normal(k_cls, (N, Cout, H, W)), axis=1)
    gt_den = jax.nn.softmax(jax.random.normal(k_den, (N, Cout, H, W)), axis=1)

    # deterministic synthetic backbone params (1x1 conv head)
    w = 0.1 * jax.random.normal(k_w, (Cout, Cin), jnp.float32)
    b = 0.1 * jax.random.normal(k_b, (Cout,), jnp.float32)

    pred, loss_den, loss_cls = crowd_counter_forward(img, gt_den, gt_cls, w, b)
    jax.block_until_ready((pred, loss_den, loss_cls))

    # pure-JAX reference check
    logits = jnp.einsum('oc,nchw->nohw', w, img) + b[None, :, None, None]
    logp = jax.nn.log_softmax(logits, axis=1)
    pred_ref = jax.nn.softmax(logits, axis=1)
    loss_den_ref = jnp.mean(jnp.sum(-gt_den * logp, axis=1))
    loss_cls_ref = jnp.mean(jnp.sum(-gt_cls * logp, axis=1))

    assert jnp.allclose(pred, pred_ref, atol=1e-5), "pred mismatch"
    assert jnp.allclose(loss_den, loss_den_ref, atol=1e-5), "loss_den mismatch"
    assert jnp.allclose(loss_cls, loss_cls_ref, atol=1e-5), "loss_cls mismatch"

    print("KERNEL_OK")
</pallas_src>

<mosaic_0001>
module attributes {stable_mosaic.version = 11 : i64} {
  func.func @crowd_counter_kernel(%arg0: i32, %arg1: i32, %arg2: memref<8xf32, #tpu.memory_space<smem>>, %arg3: memref<2xf32, #tpu.memory_space<smem>>, %arg4: memref<2x4x128xf32, #tpu.memory_space<vmem>>, %arg5: memref<2x2x128xf32, #tpu.memory_space<vmem>>, %arg6: memref<2x2x128xf32, #tpu.memory_space<vmem>>, %arg7: memref<2x2x128xf32, #tpu.memory_space<vmem>>, %arg8: memref<1x1x1x128xf32, #tpu.memory_space<vmem>>, %arg9: memref<1x1x1x128xf32, #tpu.memory_space<vmem>>) attributes {dimension_semantics = [#tpu.dimension_semantics<parallel>, #tpu.dimension_semantics<parallel>], iteration_bounds = array<i64: 1, 2>, scalar_prefetch = 2 : i64, scratch_operands = 0 : i64, tpu.core_type = #tpu.core_type<tc>, window_params = [{transform_indices = @transform_0, window_bounds = array<i64: 2, 4, 128>}, {transform_indices = @transform_1, window_bounds = array<i64: 2, 2, 128>}, {transform_indices = @transform_2, window_bounds = array<i64: 2, 2, 128>}, {transform_indices = @transform_3, window_bounds = array<i64: 2, 2, 128>}, {transform_indices = @transform_4, window_bounds = array<i64: 1, 1, 1, 128>}, {transform_indices = @transform_5, window_bounds = array<i64: 1, 1, 1, 128>}]} {
    %c0 = arith.constant 0 : index
    %c0_0 = arith.constant 0 : index
    %c0_1 = arith.constant 0 : index
    %0 = vector.load %arg4[%c0, %c0_0, %c0_1] : memref<2x4x128xf32, #tpu.memory_space<vmem>>, vector<2x1x128xf32>
    %1 = vector.shape_cast %0 : vector<2x1x128xf32> to vector<2x128xf32>
    %c0_2 = arith.constant 0 : index
    %c1 = arith.constant 1 : index
    %c0_3 = arith.constant 0 : index
    %2 = vector.load %arg4[%c0_2, %c1, %c0_3] : memref<2x4x128xf32, #tpu.memory_space<vmem>>, vector<2x1x128xf32>
    %3 = vector.shape_cast %2 : vector<2x1x128xf32> to vector<2x128xf32>
    %c0_4 = arith.constant 0 : index
    %c2 = arith.constant 2 : index
    %c0_5 = arith.constant 0 : index
    %4 = vector.load %arg4[%c0_4, %c2, %c0_5] : memref<2x4x128xf32, #tpu.memory_space<vmem>>, vector<2x1x128xf32>
    %5 = vector.shape_cast %4 : vector<2x1x128xf32> to vector<2x128xf32>
    %c0_6 = arith.constant 0 : index
    %c3 = arith.constant 3 : index
    %c0_7 = arith.constant 0 : index
    %6 = vector.load %arg4[%c0_6, %c3, %c0_7] : memref<2x4x128xf32, #tpu.memory_space<vmem>>, vector<2x1x128xf32>
    %7 = vector.shape_cast %6 : vector<2x1x128xf32> to vector<2x128xf32>
    %c0_8 = arith.constant 0 : index
    %8 = memref.load %arg2[%c0_8] : memref<8xf32, #tpu.memory_space<smem>>
    %9 = vector.broadcast %8 : f32 to vector<2x128xf32>
    %10 = arith.mulf %1, %9 : vector<2x128xf32>
    %c0_9 = arith.constant 0 : index
    %11 = memref.load %arg3[%c0_9] : memref<2xf32, #tpu.memory_space<smem>>
    %12 = vector.broadcast %11 : f32 to vector<2x128xf32>
    %13 = arith.addf %10, %12 : vector<2x128xf32>
    %c1_10 = arith.constant 1 : index
    %14 = memref.load %arg2[%c1_10] : memref<8xf32, #tpu.memory_space<smem>>
    %15 = vector.broadcast %14 : f32 to vector<2x128xf32>
    %16 = arith.mulf %3, %15 : vector<2x128xf32>
    %17 = arith.addf %13, %16 : vector<2x128xf32>
    %c2_11 = arith.constant 2 : index
    %18 = memref.load %arg2[%c2_11] : memref<8xf32, #tpu.memory_space<smem>>
    %19 = vector.broadcast %18 : f32 to vector<2x128xf32>
    %20 = arith.mulf %5, %19 : vector<2x128xf32>
    %21 = arith.addf %17, %20 : vector<2x128xf32>
    %c3_12 = arith.constant 3 : index
    %22 = memref.load %arg2[%c3_12] : memref<8xf32, #tpu.memory_space<smem>>
    %23 = vector.broadcast %22 : f32 to vector<2x128xf32>
    %24 = arith.mulf %7, %23 : vector<2x128xf32>
    %25 = arith.addf %21, %24 : vector<2x128xf32>
    %c4 = arith.constant 4 : index
    %26 = memref.load %arg2[%c4] : memref<8xf32, #tpu.memory_space<smem>>
    %27 = vector.broadcast %26 : f32 to vector<2x128xf32>
    %28 = arith.mulf %1, %27 : vector<2x128xf32>
    %c1_13 = arith.constant 1 : index
    %29 = memref.load %arg3[%c1_13] : memref<2xf32, #tpu.memory_space<smem>>
    %30 = vector.broadcast %29 : f32 to vector<2x128xf32>
    %31 = arith.addf %28, %30 : vector<2x128xf32>
    %c5 = arith.constant 5 : index
    %32 = memref.load %arg2[%c5] : memref<8xf32, #tpu.memory_space<smem>>
    %33 = vector.broadcast %32 : f32 to vector<2x128xf32>
    %34 = arith.mulf %3, %33 : vector<2x128xf32>
    %35 = arith.addf %31, %34 : vector<2x128xf32>
    %c6 = arith.constant 6 : index
    %36 = memref.load %arg2[%c6] : memref<8xf32, #tpu.memory_space<smem>>
    %37 = vector.broadcast %36 : f32 to vector<2x128xf32>
    %38 = arith.mulf %5, %37 : vector<2x128xf32>
    %39 = arith.addf %35, %38 : vector<2x128xf32>
    %c7 = arith.constant 7 : index
    %40 = memref.load %arg2[%c7] : memref<8xf32, #tpu.memory_space<smem>>
    %41 = vector.broadcast %40 : f32 to vector<2x128xf32>
    %42 = arith.mulf %7, %41 : vector<2x128xf32>
    %43 = arith.addf %39, %42 : vector<2x128xf32>
    %44 = arith.maximumf %25, %43 : vector<2x128xf32>
    %45 = arith.subf %25, %44 : vector<2x128xf32>
    %46 = math.exp %45 : vector<2x128xf32>
    %47 = arith.subf %43, %44 : vector<2x128xf32>
    %48 = math.exp %47 : vector<2x128xf32>
    %49 = arith.addf %46, %48 : vector<2x128xf32>
    %50 = math.log %49 : vector<2x128xf32>
    %51 = arith.addf %44, %50 : vector<2x128xf32>
    %cst = arith.constant 0.000000e+00 : f32
    %52 = vector.broadcast %cst : f32 to vector<1x1xf32>
    %cst_14 = arith.constant 0.000000e+00 : f32
    %53 = vector.broadcast %cst_14 : f32 to vector<1x1xf32>
    %54 = arith.subf %25, %51 : vector<2x128xf32>
    %55 = math.exp %54 : vector<2x128xf32>
    %c0_15 = arith.constant 0 : index
    %c0_16 = arith.constant 0 : index
    %c0_17 = arith.constant 0 : index
    %56 = vector.load %arg7[%c0_15, %c0_16, %c0_17] : memref<2x2x128xf32, #tpu.memory_space<vmem>>, vector<2x1x128xf32>
    %57 = vector.shape_cast %56 : vector<2x1x128xf32> to vector<2x128xf32>
    %58 = vector.shape_cast %55 : vector<2x128xf32> to vector<2x1x128xf32>
    tpu.vector_store %arg7[%c0_15, %c0_16, %c0_17], %58 {strides = array<i32>} : memref<2x2x128xf32, #tpu.memory_space<vmem>>, vector<2x1x128xf32>,
    %59 = arith.subf %51, %25 : vector<2x128xf32>
    %c0_18 = arith.constant 0 : index
    %c0_19 = arith.constant 0 : index
    %c0_20 = arith.constant 0 : index
    %60 = vector.load %arg5[%c0_18, %c0_19, %c0_20] : memref<2x2x128xf32, #tpu.memory_space<vmem>>, vector<2x1x128xf32>
    %61 = vector.shape_cast %60 : vector<2x1x128xf32> to vector<2x128xf32>
    %62 = arith.mulf %61, %59 : vector<2x128xf32>
    %c0_21 = arith.constant 0 : index
    %c0_22 = arith.constant 0 : index
    %c0_23 = arith.constant 0 : index
    %63 = vector.load %arg6[%c0_21, %c0_22, %c0_23] : memref<2x2x128xf32, #tpu.memory_space<vmem>>, vector<2x1x128xf32>
    %64 = vector.shape_cast %63 : vector<2x1x128xf32> to vector<2x128xf32>
    %65 = arith.mulf %64, %59 : vector<2x128xf32>
    %66 = vector.shape_cast %62 : vector<2x128xf32> to vector<1x2x128xf32>
    %cst_24 = arith.constant dense<0.000000e+00> : vector<1xf32>
    %67 = vector.multi_reduction <add>, %66, %cst_24 [1, 2] : vector<1x2x128xf32> to vector<1xf32>
    %68 = vector.shape_cast %67 : vector<1xf32> to vector<1x1x1xf32>
    %69 = vector.extract %68[0, 0, 0] : f32 from vector<1x1x1xf32>
    %70 = vector.broadcast %69 : f32 to vector<1x1xf32>
    %71 = arith.addf %52, %70 : vector<1x1xf32>
    %72 = vector.shape_cast %65 : vector<2x128xf32> to vector<1x2x128xf32>
    %cst_25 = arith.constant dense<0.000000e+00> : vector<1xf32>
    %73 = vector.multi_reduction <add>, %72, %cst_25 [1, 2] : vector<1x2x128xf32> to vector<1xf32>
    %74 = vector.shape_cast %73 : vector<1xf32> to vector<1x1x1xf32>
    %75 = vector.extract %74[0, 0, 0] : f32 from vector<1x1x1xf32>
    %76 = vector.broadcast %75 : f32 to vector<1x1xf32>
    %77 = arith.addf %53, %76 : vector<1x1xf32>
    %78 = arith.subf %43, %51 : vector<2x128xf32>
    %79 = math.exp %78 : vector<2x128xf32>
    %c0_26 = arith.constant 0 : index
    %c1_27 = arith.constant 1 : index
    %c0_28 = arith.constant 0 : index
    %80 = vector.load %arg7[%c0_26, %c1_27, %c0_28] : memref<2x2x128xf32, #tpu.memory_space<vmem>>, vector<2x1x128xf32>
    %81 = vector.shape_cast %80 : vector<2x1x128xf32> to vector<2x128xf32>
    %82 = vector.shape_cast %79 : vector<2x128xf32> to vector<2x1x128xf32>
    tpu.vector_store %arg7[%c0_26, %c1_27, %c0_28], %82 {strides = array<i32>} : memref<2x2x128xf32, #tpu.memory_space<vmem>>, vector<2x1x128xf32>,
    %83 = arith.subf %51, %43 : vector<2x128xf32>
    %c0_29 = arith.constant 0 : index
    %c1_30 = arith.constant 1 : index
    %c0_31 = arith.constant 0 : index
    %84 = vector.load %arg5[%c0_29, %c1_30, %c0_31] : memref<2x2x128xf32, #tpu.memory_space<vmem>>, vector<2x1x128xf32>
    %85 = vector.shape_cast %84 : vector<2x1x128xf32> to vector<2x128xf32>
    %86 = arith.mulf %85, %83 : vector<2x128xf32>
    %c0_32 = arith.constant 0 : index
    %c1_33 = arith.constant 1 : index
    %c0_34 = arith.constant 0 : index
    %87 = vector.load %arg6[%c0_32, %c1_33, %c0_34] : memref<2x2x128xf32, #tpu.memory_space<vmem>>, vector<2x1x128xf32>
    %88 = vector.shape_cast %87 : vector<2x1x128xf32> to vector<2x128xf32>
    %89 = arith.mulf %88, %83 : vector<2x128xf32>
    %90 = vector.shape_cast %86 : vector<2x128xf32> to vector<1x2x128xf32>
    %cst_35 = arith.constant dense<0.000000e+00> : vector<1xf32>
    %91 = vector.multi_reduction <add>, %90, %cst_35 [1, 2] : vector<1x2x128xf32> to vector<1xf32>
    %92 = vector.shape_cast %91 : vector<1xf32> to vector<1x1x1xf32>
    %93 = vector.extract %92[0, 0, 0] : f32 from vector<1x1x1xf32>
    %94 = vector.broadcast %93 : f32 to vector<1x1xf32>
    %95 = arith.addf %71, %94 : vector<1x1xf32>
    %96 = vector.shape_cast %89 : vector<2x128xf32> to vector<1x2x128xf32>
    %cst_36 = arith.constant dense<0.000000e+00> : vector<1xf32>
    %97 = vector.multi_reduction <add>, %96, %cst_36 [1, 2] : vector<1x2x128xf32> to vector<1xf32>
    %98 = vector.shape_cast %97 : vector<1xf32> to vector<1x1x1xf32>
    %99 = vector.extract %98[0, 0, 0] : f32 from vector<1x1x1xf32>
    %100 = vector.broadcast %99 : f32 to vector<1x1xf32>
    %101 = arith.addf %77, %100 : vector<1x1xf32>
    %102 = vector.shape_cast %95 : vector<1x1xf32> to vector<1x1x1x1xf32>
    %103 = vector.shape_cast %102 : vector<1x1x1x1xf32> to vector<1x1x1x1xf32>
    %104 = vector.broadcast %103 : vector<1x1x1x1xf32> to vector<1x1x1x128xf32>
    %c0_37 = arith.constant 0 : index
    %c0_38 = arith.constant 0 : index
    %c0_39 = arith.constant 0 : index
    %c0_40 = arith.constant 0 : index
    %105 = vector.load %arg8[%c0_37, %c0_38, %c0_39, %c0_40] : memref<1x1x1x128xf32, #tpu.memory_space<vmem>>, vector<1x1x1x128xf32>
    tpu.vector_store %arg8[%c0_37, %c0_38, %c0_39, %c0_40], %104 {strides = array<i32>} : memref<1x1x1x128xf32, #tpu.memory_space<vmem>>, vector<1x1x1x128xf32>,
    %106 = vector.shape_cast %101 : vector<1x1xf32> to vector<1x1x1x1xf32>
    %107 = vector.shape_cast %106 : vector<1x1x1x1xf32> to vector<1x1x1x1xf32>
    %108 = vector.broadcast %107 : vector<1x1x1x1xf32> to vector<1x1x1x128xf32>
    %c0_41 = arith.constant 0 : index
    %c0_42 = arith.constant 0 : index
    %c0_43 = arith.constant 0 : index
    %c0_44 = arith.constant 0 : index
    %109 = vector.load %arg9[%c0_41, %c0_42, %c0_43, %c0_44] : memref<1x1x1x128xf32, #tpu.memory_space<vmem>>, vector<1x1x1x128xf32>
    tpu.vector_store %arg9[%c0_41, %c0_42, %c0_43, %c0_44], %108 {strides = array<i32>} : memref<1x1x1x128xf32, #tpu.memory_space<vmem>>, vector<1x1x1x128xf32>,
    return
  }
  func.func @transform_0(%arg0: i32, %arg1: i32, %arg2: memref<8xf32, #tpu.memory_space<smem>>, %arg3: memref<2xf32, #tpu.memory_space<smem>>) -> (i32, i32, i32) {
    %c0_i32 = arith.constant 0 : i32
    %c0_i32_0 = arith.constant 0 : i32
    return %arg0, %c0_i32, %arg1 : i32, i32, i32
  }
  func.func @transform_1(%arg0: i32, %arg1: i32, %arg2: memref<8xf32, #tpu.memory_space<smem>>, %arg3: memref<2xf32, #tpu.memory_space<smem>>) -> (i32, i32, i32) {
    %c0_i32 = arith.constant 0 : i32
    %c0_i32_0 = arith.constant 0 : i32
    return %arg0, %c0_i32, %arg1 : i32, i32, i32
  }
  func.func @transform_2(%arg0: i32, %arg1: i32, %arg2: memref<8xf32, #tpu.memory_space<smem>>, %arg3: memref<2xf32, #tpu.memory_space<smem>>) -> (i32, i32, i32) {
    %c0_i32 = arith.constant 0 : i32
    %c0_i32_0 = arith.constant 0 : i32
    return %arg0, %c0_i32, %arg1 : i32, i32, i32
  }
  func.func @transform_3(%arg0: i32, %arg1: i32, %arg2: memref<8xf32, #tpu.memory_space<smem>>, %arg3: memref<2xf32, #tpu.memory_space<smem>>) -> (i32, i32, i32) {
    %c0_i32 = arith.constant 0 : i32
    %c0_i32_0 = arith.constant 0 : i32
    return %arg0, %c0_i32, %arg1 : i32, i32, i32
  }
  func.func @transform_4(%arg0: i32, %arg1: i32, %arg2: memref<8xf32, #tpu.memory_space<smem>>, %arg3: memref<2xf32, #tpu.memory_space<smem>>) -> (i32, i32, i32, i32) {
    %c0_i32 = arith.constant 0 : i32
    %c0_i32_0 = arith.constant 0 : i32
    %c0_i32_1 = arith.constant 0 : i32
    return %arg0, %arg1, %c0_i32, %c0_i32_0 : i32, i32, i32, i32
  }
  func.func @transform_5(%arg0: i32, %arg1: i32, %arg2: memref<8xf32, #tpu.memory_space<smem>>, %arg3: memref<2xf32, #tpu.memory_space<smem>>) -> (i32, i32, i32, i32) {
    %c0_i32 = arith.constant 0 : i32
    %c0_i32_0 = arith.constant 0 : i32
    %c0_i32_1 = arith.constant 0 : i32
    return %arg0, %arg1, %c0_i32, %c0_i32_0 : i32, i32, i32, i32
  }
}

</mosaic_0001>

<bundles_post_ra>
// kernel: tpu_custom_call.1
= control target key start
LH: loop header
LB: loop body
LE: loop exit
PB: predicated region body
PF: predicated region fallthrough
CT: control target
= control target key end

     0   :  { %s1620_s0 = inlined_call_operand.hbm [shape: f32[8], index: 0, kind: input, shape index: {}]   ;;  %s1621_s2 = inlined_call_operand.hbm [shape: f32[2,4,256], index: 2, kind: input, shape index: {}]   ;;  %s1622_s3 = inlined_call_operand.vmem [shape: f32[2,2,256], index: 3, kind: input, shape index: {}]   ;;  %s1623_s4 = inlined_call_operand.hbm [shape: f32[2,2,256], index: 4, kind: input, shape index: {}]   ;;  %s1624_s5 = inlined_call_operand.hbm [shape: f32[2,2,256], index: 5, kind: output, shape index: {0}]   ;;  %s1625_s6 = inlined_call_operand.hbm [shape: f32[1,2,1,128], index: 6, kind: output, shape index: {1}]   ;;  %s1626_s7 = inlined_call_operand.hbm [shape: f32[1,2,1,128], index: 7, kind: output, shape index: {2}]   ;;  %s1627_s1 = inlined_call_operand.vmem [shape: f32[2], index: 1, kind: input, shape index: {}]  }
   0x1   :  { %1631 = sst [smem:[#allocation20_spill]] %s1621_s2  ;;  %s968_s26 = scalar_lea.hbm %s1620_s0, 16 }
   0x2   :  { %1632 = sst [smem:[#allocation21_spill]] %s1622_s3  ;;  %p969_p0 = scmp.ne.s32.totalorder %s1620_s0, %s968_s26 }
   0x3   :  { %1633 = sst [smem:[#allocation22_spill]] %s1623_s4  ;;  %p972_p1 = scmp.lt.u32.totalorder %s968_s26, %s1620_s0 }
   0x5   :  { %p974_p2 = pnand %p972_p1, %p969_p0 }
   0x7   :  { %977 = shalt.err (!%p974_p2)  }
   0x8   :  { %s1196_s8 = smov [#allocation3]   ;;  %s15_s13 = sshll.u32 %s1627_s1, 4  ;;  %s16_s13 = int_to_ptr.vmem [resolvable:$true] %s15_s13 }
   0x9   :  { %14 = dma.hbm_to_smem %s1620_s0, 16, %s1196_s8, [#allocation2] }
   0xa   :  { %s978_s14 = scalar_lea.vmem %s16_s13, 16  ;;  %p983_p4 = scmp.lt.s32.totalorder %s16_s13, %s16_s13 }
   0xb   :  { %p979_p3 = scmp.ne.s32.totalorder %s16_s13, %s978_s14  ;;  %p984_p5 = scmp.lt.s32.totalorder %s978_s14, %s978_s14 }
   0xd   :  { %p985_p6 = por %p984_p5, %p983_p4 }
   0xf   :  { %p986_p7 = pnand %p985_p6, %p979_p3 }
  0x11   :  { %989 = shalt.err (!%p986_p7)  }
  0x12   :  { %s1197_s15 = smov [#allocation4]  }
  0x13   :  { %18 = dma.vmem_to_smem %s16_s13, 16, %s1197_s15, [#allocation2] }
  0x14   :  { %1154 = dma.done.wait [#allocation2], 32 }
  0x15   :  { %1155 = vsyncadd [#allocation2], 4294967264 }
  0x16   :  { %20 = sfence }
  0x17   :  { %21 = vsyncpa [#allocation6], 0 }
  0x18   :  { %23 = vsyncpa [#allocation6 + $0x1], 0 }
  0x19   :  { %24 = vsyncpa [#allocation10], 0 }
  0x1a   :  { %26 = vsyncpa [#allocation10 + $0x1], 0 }
  0x1b   :  { %27 = vsyncpa [#allocation7], 0 }
  0x1c   :  { %29 = vsyncpa [#allocation7 + $0x1], 0 }
  0x1d   :  { %30 = vsyncpa [#allocation13], 0 }
  0x1e   :  { %32 = vsyncpa [#allocation13 + $0x1], 0  ;;  %s1266_s0 = smov 0   ;;  %s1268_s1 = smov 0  }
  0x1f   :  { %s1270_s16 = smov 0   ;;  %s1272_s17 = smov 0  }
  0x20   :  { %s1274_s18 = smov 0   ;;  %s1276_s19 = smov 0  }
  0x21 LB: > { %s1297_s20 = sadd.s32 4294967295, %s1194_s19   ;;  %s1628_s21 = sadd.s32 4294967294, %s1194_s19   ;;  %s1194_s19 = sphi %s1276_s19, %s38_s19   ;;  %s1190_s18 = sphi %s1274_s18, %s1649_s18   ;;  %s1186_s17 = sphi %s1272_s17, %s1648_s17   ;;  %s1182_s16 = sphi %s1270_s16, %s1647_s16   ;;  %s1178_s1 = sphi %s1268_s1, %s1646_s1   ;;  %s1174_s0 = sphi %s1266_s0, %s1645_s0  }
  0x22   : > { %s47_s22 = sadd.s32 1, %s1190_s18  ;;  %s59_s23 = sadd.s32 1, %s1182_s16 }
  0x23   : > { %p48_p8 = scmp.ge.s32.totalorder %s47_s22, 2  ;;  %p66_p9 = scmp.ne.s32.totalorder %s1182_s16, %s1178_s1 }
  0x24   : > { %p67_p10 = scmp.eq.s32.totalorder %s1194_s19, 0  ;;  %p72_p11 = scmp.ne.s32.totalorder %s1178_s1, %s1174_s0 }
  0x25   : > { %s1651_s22 = smov (%p48_p8, %s47_s22), 0  ;;  %p73_p13 = scmp.eq.s32.totalorder %s1297_s20, 0 }
  0x26   : > { %p1309_p12 = por %p67_p10, %p66_p9  ;;  %s55_s25 = ssub.s32 %s1190_s18, %s1651_s22 }
  0x27   : > { %p154_p0 = scmp.eq.s32.totalorder %s1297_s20, 1  ;;  %p57_p1 = scmp.eq.s32.totalorder %s55_s25, 0 }
  0x28   : > { %p1317_p2 = por %p73_p13, %p72_p11  ;;  %p160_p4 = scmp.eq.s32.totalorder %s1628_s21, 1 }
  0x29   : > { %p1321_p3 = por %p154_p0, %p66_p9  ;;  %p1629_p6 = scmp.ge.s32.totalorder %s1194_s19, 2 }
  0x2a   : > { %s1328_s28 = scalar_select %p57_p1, %s1182_s16, %s59_s23  }
  0x2b   : > { %s1636_s27 = scalar_select %p1321_p3, 1, 0 }
  0x2c   : > { %p1330_p5 = por %p160_p4, %p72_p11  ;;  %232 = sbr.rel (%p1629_p6) target bundleno = 117 (0x75), region = 16 }
  0x2d   : > { %s1338_s30 = sand.u32 (!%p1629_p6), 1, %s1182_s16   ;;  %s837_s8 = sshll.u32 (!%p1629_p6), %s1190_s18, 6 }
  0x2e   : > { %s1637_s29 = scalar_select %p1330_p5, 1, 0 }
  0x2f   : > { %s836_s9 = sshll.u32 (!%p1629_p6), %s1338_s30, 3  ;;  %s1638_s2 = sld [smem:[#allocation20_spill]] (!%p1629_p6) }
  0x30   : > { %s240_s13 = scalar_lea.vmem (!%p1629_p6), [#allocation5], %s836_s9  ;;  %s237_s15 = scalar_lea.sflag (!%p1629_p6), [#allocation6], %s1338_s30 }
  0x31   : > { %s249_s14 = sshll.u32 (!%p1629_p6), %s240_s13, 4  ;;  %s1347_s14 = int_to_ptr.vmem [resolvable:$true] %s249_s14 }
  0x35   : > { %s1345_s12 = scalar_lea.hbm %s1638_s2, %s837_s8  ;;  %s994_s10 = scalar_lea.hbm %s1638_s2, 256 }
  0x36   : > { %s990_s23 = scalar_lea.hbm %s1345_s12, 128  ;;  %p995_p10 = scmp.lt.u32.totalorder %s1345_s12, %s1638_s2 }
  0x37   : > { %p991_p7 = scmp.ne.s32.totalorder %s1345_s12, %s990_s23  ;;  %p996_p11 = scmp.lt.u32.totalorder %s994_s10, %s990_s23 }
  0x38   : > { %p998_p0 = scmp.lt.u32.totalorder %s990_s23, %s1345_s12 }
  0x39   : > { %p992_p8 = pnand %p991_p7, %p1309_p12  ;;  %p997_p13 = por %p996_p11, %p995_p10 }
  0x3b   : > { %p993_p9 = pneg %p992_p8  ;;  %p999_p1 = por %p998_p0, %p997_p13 }
  0x3d   : > { %p1000_p4 = pnand %p999_p1, %p993_p9 }
  0x3f   : > { %1003 = shalt.err (!%p1000_p4)
}
  0x40   : > { %s1004_s9 = scalar_lea.vmem %s1347_s14, 128  ;;  %s1198_s21 = smov [#allocation5]  }
  0x41   : > { %p1005_p7 = scmp.ne.s32.totalorder %s1347_s14, %s1004_s9  ;;  %s1008_s13 = sshll.u32 %s1198_s21, 4  ;;  %s1009_s13 = int_to_ptr.vmem [resolvable:$false] %s1008_s13 }
  0x42   : > { %s1010_s25 = scalar_lea.vmem %s1009_s13, 256  ;;  %p1011_p5 = scmp.lt.s32.totalorder %s1347_s14, %s1009_s13 }
  0x43   : > { %p1006_p8 = pnand %p1005_p7, %p1309_p12  ;;  %p1012_p3 = scmp.lt.s32.totalorder %s1010_s25, %s1004_s9 }
  0x45   : > { %p1007_p6 = pneg %p1006_p8  ;;  %p1013_p10 = por %p1012_p3, %p1011_p5 }
  0x47   : > { %p1014_p11 = pnand %p1013_p10, %p1007_p6 }
  0x49   : > { %1017 = shalt.err (!%p1014_p11)
}
  0x4a   : > { %s1199_s23 = smov 128   ;;  %s1200_s10 = smov 64  }
  0x4b   : > { %s1201_s8 = smov 4   ;;  %258 = sbr.rel (!%p1309_p12) target bundleno = 87 (0x57), region = 24 }
  0x4c   : > { %869 = dma.hbm_to_vmem [thread:$0]  (%p1309_p12), %s1345_s12, 128, %s1347_s14, %s237_s15, %s1199_s23, %s1200_s10, %s1201_s8  }
  0x4d   : > { %s838_s11 = sshll.u32 (%p1309_p12), %s1338_s30, 2  ;;  %s839_s9 = sshll.u32 (%p1309_p12), %s1190_s18, 1 }
  0x4e   : > { %s1639_s3 = sld [smem:[#allocation21_spill]] (%p1309_p12)  ;;  %s262_s2 = scalar_lea.vmem (%p1309_p12), [#allocation8], %s838_s11 }
  0x54   : > { %s267_s25 = scalar_lea.vmem %s1639_s3, %s839_s9 }
  0x55   : > { %v283_v0 = vld [vmem:[%s267_s25] sm:$0x3]  ;;  %v285_v1 = vld [vmem:[%s267_s25 + $0x4] sm:$0x3] }
  0x56   : > { %284 = vst [vmem:[%s262_s2] sm:$0x3] %v283_v0  ;;  %286 = vst [vmem:[%s262_s2 + $0x2] sm:$0x3] %v285_v1 }
  0x57 PF: > { %s840_s12 = sshll.u32 %s1338_s30, 2  ;;  %s841_s14 = sshll.u32 %s1190_s18, 5 }
  0x58   : > { %s1640_s4 = sld [smem:[#allocation22_spill]]  ;;  %s310_s9 = scalar_lea.vmem [#allocation9], %s840_s12 }
  0x59   : > { %s319_s11 = sshll.u32 %s310_s9, 4  ;;  %s307_s2 = scalar_lea.sflag [#allocation10], %s1338_s30  ;;  %s1388_s11 = int_to_ptr.vmem [resolvable:$true] %s319_s11 }
  0x5e   : > { %s1386_s8 = scalar_lea.hbm %s1640_s4, %s841_s14  ;;  %s1022_s15 = scalar_lea.hbm %s1640_s4, 128 }
  0x5f   : > { %s1018_s21 = scalar_lea.hbm %s1386_s8, 64  ;;  %p1023_p9 = scmp.lt.u32.totalorder %s1386_s8, %s1640_s4 }
  0x60   : > { %p1019_p3 = scmp.ne.s32.totalorder %s1386_s8, %s1018_s21  ;;  %p1024_p13 = scmp.lt.u32.totalorder %s1022_s15, %s1018_s21 }
  0x61   : > { %p1026_p1 = scmp.lt.u32.totalorder %s1018_s21, %s1386_s8 }
  0x62   : > { %p1020_p5 = pnand %p1019_p3, %p1309_p12  ;;  %p1025_p0 = por %p1024_p13, %p1023_p9 }
  0x64   : > { %p1021_p6 = pneg %p1020_p5  ;;  %p1027_p4 = por %p1026_p1, %p1025_p0 }
  0x66   : > { %p1028_p7 = pnand %p1027_p4, %p1021_p6 }
  0x68   : > { %1031 = shalt.err (!%p1028_p7)
}
  0x69   : > { %s1032_s12 = scalar_lea.vmem %s1388_s11, 64  ;;  %s1202_s9 = smov [#allocation9]  }
  0x6a   : > { %p1033_p8 = scmp.ne.s32.totalorder %s1388_s11, %s1032_s12  ;;  %s1036_s13 = sshll.u32 %s1202_s9, 4  ;;  %s1037_s13 = int_to_ptr.vmem [resolvable:$false] %s1036_s13 }
  0x6b   : > { %s1038_s25 = scalar_lea.vmem %s1037_s13, 128  ;;  %p1039_p3 = scmp.lt.s32.totalorder %s1388_s11, %s1037_s13 }
  0x6c   : > { %p1034_p10 = pnand %p1033_p8, %p1309_p12  ;;  %p1040_p5 = scmp.lt.s32.totalorder %s1038_s25, %s1032_s12 }
  0x6e   : > { %p1035_p11 = pneg %p1034_p10  ;;  %p1041_p9 = por %p1040_p5, %p1039_p3 }
  0x70   : > { %p1042_p13 = pnand %p1041_p9, %p1035_p11 }
  0x72   : > { %1045 = shalt.err (!%p1042_p13)
}
  0x73   : > { %s1203_s21 = smov 32   ;;  %s1204_s15 = smov 2  }
  0x74   : > { %870 = dma.hbm_to_vmem [thread:$0]  (%p1309_p12), %s1386_s8, 64, %s1388_s11, %s307_s2, %s1200_s10, %s1203_s21, %s1204_s15  }
  0x75 PF: > { %p842_p6 = scmp.ge.s32.totalorder %s1194_s19, 1  ;;  %p327_p0 = scmp.lt.s32.totalorder %s1194_s19, 3 }
  0x77   : > { %p328_p1 = pnand %p842_p6, %p327_p0 }
  0x78   : > { %s1418_s14 = sand.u32 (!%p328_p1), 1, %s1178_s1  }
  0x79   : > { %331 = sbr.rel (%p328_p1) target bundleno = 447 (0x1bf), region = 62  ;;  %s843_s23 = sshll.u32 (!%p328_p1), %s1418_s14, 3 }
  0x7a   : > { %s334_s12 = scalar_lea.sflag (!%p328_p1), [#allocation6], %s1418_s14  ;;  %s337_s9 = scalar_lea.vmem (!%p328_p1), [#allocation5], %s843_s23 }
  0x80   : > { %1157 = dma.done.wait (%p1317_p2), %s334_s12, 128  }
  0x81   : > { %1159 = vsyncadd (%p1317_p2), %s334_s12, 4294967168  ;;  %s1427_s24 = sshll.u32 %s1418_s14, 2  ;;  %s350_s10 = scalar_lea.sflag [#allocation10], %s1418_s14 }
  0x82   : > { %s1430_s30 = scalar_lea.vmem [#allocation8], %s1427_s24  ;;  %s1434_s8 = scalar_lea.vmem [#allocation9], %s1427_s24 }
  0x83   : > { %1161 = dma.done.wait (%p1317_p2), %s350_s10, 64  }
  0x84   : > { %1163 = vsyncadd (%p1317_p2), %s350_s10, 4294967232  ;;  %s409_s11 = sld [smem:[#allocation3]]  ;;  %s847_s13 = sld [smem:[#allocation3 + $0x1]]  ;;  %v401_v2 = vld [vmem:[%s337_s9] sm:$0x1]  ;;  %vm504_vm0 = vcmask 1041409  }
  0x85   : > { %s413_s2 = sld [smem:[#allocation4]]  ;;  %s848_s25 = sld [smem:[#allocation3 + $0x2]]  ;;  %v402_v3 = vld [vmem:[%s337_s9 + $0x4] sm:$0x1]  ;;  %v403_v4 = vld [vmem:[%s337_s9 + $0x1] sm:$0x1] }
  0x86   : > { %s1440_s21 = sld [smem:[#allocation3 + $0x3]]  ;;  %s1442_s15 = sld [smem:[#allocation3 + $0x4]]  ;;  %v404_v6 = vld [vmem:[%s337_s9 + $0x5] sm:$0x1]  ;;  %v405_v7 = vld [vmem:[%s337_s9 + $0x2] sm:$0x1] }
  0x87   : > { %s1444_s23 = sld [smem:[#allocation4 + $0x1]]  ;;  %s1446_s12 = sld [smem:[#allocation3 + $0x5]]  ;;  %v406_v8 = vld [vmem:[%s337_s9 + $0x6] sm:$0x1]  ;;  %v407_v12 = vld [vmem:[%s337_s9 + $0x3] sm:$0x1] }
  0x88   : > { %s1448_s3 = sld [smem:[#allocation3 + $0x6]]  ;;  %s1450_s4 = sld [smem:[#allocation3 + $0x7]]  ;;  %v408_v13 = vld [vmem:[%s337_s9 + $0x7] sm:$0x1]  ;;  %vm507_vm1 = vcmask 1041408  }
  0x89   : > { %p1641_p2 = scmp.ne.s32.totalorder %s1636_s27, 0 }
  0x8a   : > { %v410_v5 = vstv %s409_s11  ;;  %v418_v14 = vstv %s847_s13 }
  0x8b   : > { %v411_v9 = vmul.f32 %v410_v5, %v401_v2  ;;  %v412_v10 = vmul.f32 %v410_v5, %v402_v3  ;;  %v414_v11 = vstv %s413_s2  ;;  %v424_v15 = vstv %s848_s25 }
  0x8c   : > { %v419_v18 = vmul.f32 %v418_v14, %v403_v4  ;;  %v420_v19 = vmul.f32 %v418_v14, %v404_v6  ;;  %v425_v20 = vmul.f32 %v424_v15, %v405_v7  ;;  %v426_v21 = vmul.f32 %v424_v15, %v406_v8 }
  0x8d   : > { %v415_v16 = vadd.f32 %v414_v11, %v411_v9  ;;  %v416_v17 = vadd.f32 %v414_v11, %v412_v10  ;;  %v430_v22 = vstv %s1440_s21  ;;  %v436_v23 = vstv %s1442_s15  ;;  %v547_v10 = vld [vmem:[%s1430_s30 + $0x1] sm:$0x1] }
  0x8e   : > { %v431_v26 = vmul.f32 %v430_v22, %v407_v12  ;;  %v432_v27 = vmul.f32 %v430_v22, %v408_v13  ;;  %v437_v28 = vmul.f32 %v436_v23, %v401_v2  ;;  %v438_v29 = vmul.f32 %v436_v23, %v402_v3  ;;  %v551_v22 = vld [vmem:[%s1434_s8 + $0x1] sm:$0x1]  ;;  %v552_v23 = vld [vmem:[%s1434_s8 + $0x3] sm:$0x1] }
  0x8f   : > { %v421_v24 = vadd.f32 %v419_v18, %v415_v16  ;;  %v422_v25 = vadd.f32 %v420_v19, %v416_v17  ;;  %v440_v30 = vstv %s1444_s23  ;;  %v444_v31 = vstv %s1446_s12  ;;  %v493_v16 = vld [vmem:[%s1430_s30] sm:$0x1]  ;;  %v494_v17 = vld [vmem:[%s1430_s30 + $0x2] sm:$0x1] }
  0x90   : > { %v445_v34 = vmul.f32 %v444_v31, %v403_v4  ;;  %v446_v35 = vmul.f32 %v444_v31, %v404_v6  ;;  %v441_v36 = vadd.f32 %v440_v30, %v437_v28  ;;  %v442_v37 = vadd.f32 %v440_v30, %v438_v29 }
  0x91   : > { %v427_v32 = vadd.f32 %v425_v20, %v421_v24  ;;  %v428_v33 = vadd.f32 %v426_v21, %v422_v25  ;;  %v450_v38 = vstv %s1448_s3  ;;  %v456_v39 = vstv %s1450_s4  ;;  %v497_v24 = vld [vmem:[%s1434_s8] sm:$0x1]  ;;  %v498_v25 = vld [vmem:[%s1434_s8 + $0x2] sm:$0x1]  ;;  %s384_s3 = scalar_lea.vmem [#allocation11], %s1427_s24  ;;  %s856_s4 = sshll.u32 %s1186_s17, 5 }
  0x92   : > { %v451_v40 = vmul.f32 %v450_v38, %v405_v7  ;;  %v452_v41 = vmul.f32 %v450_v38, %v406_v8  ;;  %v447_v42 = vadd.f32 %v445_v34, %v441_v36  ;;  %v448_v43 = vadd.f32 %v446_v35, %v442_v37  ;;  %s615_s26 = sshll.u32 %s384_s3, 4  ;;  %s1503_s10 = scalar_lea.hbm %s1624_s5, %s856_s4  ;;  %s1505_s26 = int_to_ptr.vmem [resolvable:$true] %s615_s26 }
  0x93   : > { %v457_v44 = vmul.f32 %v456_v39, %v407_v12  ;;  %v458_v45 = vmul.f32 %v456_v39, %v408_v13  ;;  %v1458_v46 = vadd.f32 %v431_v26, %v427_v32  ;;  %v1460_v47 = vadd.f32 %v432_v27, %v428_v33  ;;  %v548_v12 = vld [vmem:[%s1430_s30 + $0x3] sm:$0x1]  ;;  %s592_s8 = scalar_lea.sflag [#allocation7], %s1418_s14  ;;  %s1046_s11 = scalar_lea.vmem %s1505_s26, 64 }
  0x94   : > { %v453_v48 = vadd.f32 %v451_v40, %v447_v42  ;;  %v454_v49 = vadd.f32 %v452_v41, %v448_v43  ;;  %p1047_p12 = scmp.ne.s32.totalorder %s1505_s26, %s1046_s11  ;;  %s1205_s24 = smov [#allocation11]  }
  0x95   : > { %s1050_s2 = sshll.u32 %s1205_s24, 4  ;;  %s1051_s2 = int_to_ptr.vmem [resolvable:$false] %s1050_s2 }
  0x96   : > { %v1462_v50 = vadd.f32 %v457_v44, %v453_v48  ;;  %v1464_v51 = vadd.f32 %v458_v45, %v454_v49  ;;  %p1048_p4 = pnand %p1047_p12, %p1641_p2  ;;  %s1052_s13 = scalar_lea.vmem %s1051_s2, 128 }
  0x97   : > { %p1053_p8 = scmp.lt.s32.totalorder %s1505_s26, %s1051_s2  ;;  %p1054_p10 = scmp.lt.s32.totalorder %s1052_s13, %s1046_s11 }
  0x98   : > { %v461_v52 = vmax.f32 %v1458_v46, %v1462_v50  ;;  %v462_v53 = vmax.f32 %v1460_v47, %v1464_v51  ;;  %p1049_p7 = pneg %p1048_p4 }
  0x99   : > { %p1055_p11 = por %p1054_p10, %p1053_p8 }
  0x9a   : > { %v463_v54 = vsub.f32 %v1458_v46, %v461_v52  ;;  %v464_v55 = vsub.f32 %v1460_v47, %v462_v53  ;;  %v469_v56 = vsub.f32 %v1462_v50, %v461_v52  ;;  %v470_v57 = vsub.f32 %v1464_v51, %v462_v53 }
  0x9b   : > { %p1056_p3 = pnand %p1055_p11, %p1049_p7 }
  0x9c   : > { %v465_v58 = vmul.f32 1.442695, %v463_v54  ;;  %v467_v59 = vmul.f32 1.442695, %v464_v55  ;;  %v471_v60 = vmul.f32 1.442695, %v469_v56 }
  0x9d   : > { %v473_v61 = vmul.f32 1.442695, %v470_v57 }
  0x9e   : > { %948 = vpow2.f32 %v465_v58 }
  0x9f   : > { %950 = vpow2.f32 %v467_v59 }
  0xa0   : > { %952 = vpow2.f32 %v471_v60 }
  0xa1   : > { %954 = vpow2.f32 %v473_v61 }
  0xa8   : > { %v949_v62 = vpop.eup %948 }
  0xa9   : > { %v951_v63 = vpop.eup %950 }
  0xaa   : > { %v953_v0 = vpop.eup %952 }
  0xab   : > { %v955_v1 = vpop.eup %954  ;;  %v475_v2 = vadd.f32 %v953_v0, %v949_v62 }
  0xac   : > { %v476_v3 = vadd.f32 %v955_v1, %v951_v63 }
  0xad   : > { %956 = vlog2.f32 %v475_v2 }
  0xae   : > { %958 = vlog2.f32 %v476_v3 }
  0xb7   : > { %v957_v4 = vpop.eup %956 }
  0xb8   : > { %v959_v5 = vpop.eup %958  ;;  %v478_v6 = vmul.f32 0.6931472, %v957_v4 }
  0xb9   : > { %v480_v7 = vmul.f32 0.6931472, %v959_v5 }
  0xba   : > { %v481_v8 = vadd.f32 %v478_v6, %v461_v52 }
  0xbb   : > { %v482_v9 = vadd.f32 %v480_v7, %v462_v53 }
  0xbc   : > { %v545_v11 = vsub.f32 %v481_v8, %v1462_v50  ;;  %v483_v13 = vsub.f32 %v1458_v46, %v481_v8  ;;  %v537_v14 = vsub.f32 %v1462_v50, %v481_v8  ;;  %v491_v15 = vsub.f32 %v481_v8, %v1458_v46 }
  0xbd   : > { %v484_v18 = vsub.f32 %v1460_v47, %v482_v9  ;;  %v538_v19 = vsub.f32 %v1464_v51, %v482_v9  ;;  %v546_v20 = vsub.f32 %v482_v9, %v1464_v51  ;;  %v492_v21 = vsub.f32 %v482_v9, %v1460_v47 }
  0xbe   : > { %v549_v26 = vmul.f32 %v547_v10, %v545_v11  ;;  %v495_v28 = vmul.f32 %v493_v16, %v491_v15  ;;  %v553_v30 = vmul.f32 %v551_v22, %v545_v11  ;;  %v499_v34 = vmul.f32 %v497_v24, %v491_v15 }
  0xbf   : > { %v550_v27 = vmul.f32 %v548_v12, %v546_v20  ;;  %v496_v29 = vmul.f32 %v494_v17, %v492_v21  ;;  %v554_v31 = vmul.f32 %v552_v23, %v546_v20  ;;  %v500_v35 = vmul.f32 %v498_v25, %v492_v21 }
  0xc0   : > { %v485_v46 = vmul.f32 1.442695, %v483_v13  ;;  %v487_v47 = vmul.f32 1.442695, %v484_v18  ;;  %v541_v48 = vmul.f32 1.442695, %v538_v19 }
  0xc1   : > { %v557_v32 = vrot.slane %v550_v27, 7  ;;  %v503_v33 = vrot.slane %v496_v29, 7  ;;  %v574_v36 = vrot.slane %v554_v31, 7  ;;  %v522_v39 = vrot.slane %v500_v35, 7 }
  0xc2   : > { %v539_v49 = vmul.f32 1.442695, %v537_v14  ;;  %960 = vpow2.f32 %v485_v46 }
  0xc3   : > { %v558_v37 = vsel %vm504_vm0, %v557_v32, %v549_v26  ;;  %v505_v38 = vsel %vm504_vm0, %v503_v33, %v495_v28  ;;  %v575_v42 = vsel %vm504_vm0, %v574_v36, %v553_v30  ;;  %v523_v43 = vsel %vm504_vm0, %v522_v39, %v499_v34 }
  0xc4   : > { %v560_v40 = vsel %vm507_vm1, %v558_v37, 0.0  ;;  %v508_v41 = vsel %vm507_vm1, %v505_v38, 0.0  ;;  %v577_v44 = vsel %vm507_vm1, %v575_v42, 0.0  ;;  %v525_v45 = vsel %vm507_vm1, %v523_v43, 0.0 }
  0xc5   : > { %561 = vadd.xlane.f32.xlu1 %v560_v40  ;;  %509 = vadd.xlane.f32.xlu0 %v508_v41  ;;  %962 = vpow2.f32 %v487_v47 }
  0xc6   : > { %964 = vpow2.f32 %v541_v48 }
  0xc7   : > { %966 = vpow2.f32 %v539_v49 }
  0xc9   : > { %578 = vadd.xlane.f32.xlu1 %v577_v44  ;;  %526 = vadd.xlane.f32.xlu0 %v525_v45 }
  0xcc   : > { %v961_v50 = vpop.eup %960 }
  0xcd   : > { %489 = vst [vmem:[%s384_s3] sm:$0x1] %v961_v50 }
  0xcf   : > { %v963_v51 = vpop.eup %962 }
  0xd0   : > { %v965_v52 = vpop.eup %964  ;;  %490 = vst [vmem:[%s384_s3 + $0x2] sm:$0x1] %v963_v51 }
  0xd1   : > { %v967_v53 = vpop.eup %966  ;;  %544 = vst [vmem:[%s384_s3 + $0x3] sm:$0x1] %v965_v52 }
  0xd2   : > { %543 = vst [vmem:[%s384_s3 + $0x1] sm:$0x1] %v967_v53 }
  0xd3   : > { %1059 = shalt.err (!%p1056_p3)
}
  0xd4   : > { %s1060_s25 = scalar_lea.hbm %s1503_s10, 64  ;;  %s1064_s23 = scalar_lea.hbm %s1624_s5, 128 }
  0xd5   : > { %p1061_p5 = scmp.ne.s32.totalorder %s1503_s10, %s1060_s25  ;;  %p1065_p6 = scmp.lt.u32.totalorder %s1503_s10, %s1624_s5 }
  0xd6   : > { %p1066_p0 = scmp.lt.u32.totalorder %s1064_s23, %s1060_s25  ;;  %p1068_p12 = scmp.lt.u32.totalorder %s1060_s25, %s1503_s10 }
  0xd7   : > { %p1062_p9 = pnand %p1061_p5, %p1641_p2 }
  0xd8   : > { %p1067_p1 = por %p1066_p0, %p1065_p6 }
  0xd9   : > { %p1063_p13 = pneg %p1062_p9 }
  0xda   : > { %p1069_p4 = por %p1068_p12, %p1067_p1 }
  0xdc   : > { %p1070_p7 = pnand %p1069_p4, %p1063_p13 }
  0xde   : > { %1073 = shalt.err (!%p1070_p7)
}
  0xdf   : > { %s1206_s4 = smov 32   ;;  %s1207_s9 = smov 64  }
  0xe0   : > { %s1208_s30 = smov 2   ;;  %s390_s24 = scalar_lea.vmem [#allocation12], %s1418_s14 }
  0xe1   : > { %873 = dma.vmem_to_hbm [thread:$0]  (%p1641_p2), %s1505_s26, 64, %s1503_s10, %s592_s8, %s1206_s4, %s1207_s9, %s1208_s30  }
  0xe2   : > { %s596_s26 = sand.u32 1, %s1297_s20   ;;  %s857_s8 = sshll.u32 %s1186_s17, 4 }
  0xe3   : > { %s633_s2 = sshll.u32 %s390_s24, 4  ;;  %s396_s25 = scalar_lea.vmem [#allocation14], %s1418_s14  ;;  %s1540_s2 = int_to_ptr.vmem [resolvable:$true] %s633_s2 }
  0xe4   : > { %s648_s21 = sshll.u32 %s396_s25, 4  ;;  %s1538_s3 = scalar_lea.hbm %s1625_s6, %s857_s8  ;;  %s1547_s21 = int_to_ptr.vmem [resolvable:$true] %s648_s21 }
  0xe5   : > { %s1545_s14 = scalar_lea.hbm %s1626_s7, %s857_s8  ;;  %s1549_s4 = scalar_lea.sflag [#allocation13], %s596_s26 }
  0xe6   : > { %s1074_s9 = scalar_lea.vmem %s1540_s2, 16  ;;  %s1209_s30 = smov [#allocation12]  }
  0xe7   : > { %p1075_p8 = scmp.ne.s32.totalorder %s1540_s2, %s1074_s9 }
  0xe9   : > { %p1076_p10 = pnand %p1075_p8, %p1641_p2 }
  0xeb   : > { %p1077_p11 = pneg %p1076_p10 }
 0x152   : > { %v562_v54 = vpop.xlane.xlu1 %561  ;;  %v510_v55 = vpop.xlane.xlu0 %509 }
 0x153   : > { %v563_v56 = vrot.slane %v562_v54, 4  ;;  %v511_v57 = vrot.slane %v510_v55, 4 }
 0x155   : > { %v564_v58 = vadd.f32 %v563_v56, %v562_v54  ;;  %v512_v59 = vadd.f32 %v511_v57, %v510_v55 }
 0x156   : > { %v579_v60 = vpop.xlane.xlu1 %578  ;;  %v527_v61 = vpop.xlane.xlu0 %526 }
 0x157   : > { %v565_v62 = vrot.slane %v564_v58, 2  ;;  %v513_v63 = vrot.slane %v512_v59, 2  ;;  %v580_v0 = vrot.slane %v579_v60, 4  ;;  %v528_v1 = vrot.slane %v527_v61, 4 }
 0x159   : > { %v581_v2 = vadd.f32 %v580_v0, %v579_v60  ;;  %v529_v3 = vadd.f32 %v528_v1, %v527_v61  ;;  %v514_v4 = vadd.f32 %v513_v63, %v512_v59  ;;  %v566_v5 = vadd.f32 %v565_v62, %v564_v58 }
 0x15b   : > { %v582_v6 = vrot.slane %v581_v2, 2  ;;  %v530_v7 = vrot.slane %v529_v3, 2  ;;  %v515_v8 = vrot.slane %v514_v4, 1  ;;  %v567_v12 = vrot.slane %v566_v5, 1 }
 0x15d   : > { %v583_v9 = vadd.f32 %v582_v6, %v581_v2  ;;  %v531_v10 = vadd.f32 %v530_v7, %v529_v3  ;;  %v516_v11 = vadd.f32 %v515_v8, %v514_v4  ;;  %v568_v17 = vadd.f32 %v567_v12, %v566_v5 }
 0x15f   : > { %861 = vpush %v516_v11  ;;  %v532_v13 = vrot.slane %v531_v10, 1  ;;  %v584_v14 = vrot.slane %v583_v9, 1 }
 0x161   : > { %v533_v15 = vadd.f32 %v532_v13, %v531_v10  ;;  %v585_v16 = vadd.f32 %v584_v14, %v583_v9 }
 0x163   : > { %863 = vpush %v533_v15 }
 0x164   : > { %865 = vpush %v568_v17 }
 0x165   : > { %867 = vpush %v585_v16 }
 0x190   : > { %s862_s10 = spop %861 }
 0x191   : > { %v518_v19 = vstv %s862_s10  ;;  %s1078_s10 = sshll.u32 %s1209_s30, 4  ;;  %s1079_s10 = int_to_ptr.vmem [resolvable:$false] %s1078_s10 }
 0x192   : > { %p1081_p3 = scmp.lt.s32.totalorder %s1540_s2, %s1079_s10 }
 0x194   : > { %s864_s11 = spop %863 }
 0x195   : > { %v535_v18 = vstv %s864_s11  ;;  %s866_s13 = spop %865  ;;  %s1080_s11 = scalar_lea.vmem %s1079_s10, 32 }
 0x196   : > { %v570_v20 = vstv %s866_s13  ;;  %s868_s15 = spop %867  ;;  %p1082_p5 = scmp.lt.s32.totalorder %s1080_s11, %s1074_s9 }
 0x197   : > { %v571_v21 = vadd.f32 %v570_v20, %v518_v19  ;;  %v587_v22 = vstv %s868_s15 }
 0x198   : > { %v588_v23 = vadd.f32 %v587_v22, %v535_v18  ;;  %p1083_p9 = por %p1082_p5, %p1081_p3 }
 0x199   : > { %589 = vst [vmem:[%s390_s24] sm:$0x1] %v571_v21 }
 0x19a   : > { %590 = vst [vmem:[%s396_s25] sm:$0x1] %v588_v23  ;;  %p1084_p13 = pnand %p1083_p9, %p1077_p11 }
 0x19c   : > { %1087 = shalt.err (!%p1084_p13)
}
 0x19d   : > { %s1088_s26 = scalar_lea.hbm %s1538_s3, 16  ;;  %s1092_s13 = scalar_lea.hbm %s1625_s6, 32 }
 0x19e   : > { %p1089_p6 = scmp.ne.s32.totalorder %s1538_s3, %s1088_s26  ;;  %p1093_p12 = scmp.lt.u32.totalorder %s1538_s3, %s1625_s6 }
 0x19f   : > { %p1094_p4 = scmp.lt.u32.totalorder %s1092_s13, %s1088_s26  ;;  %p1096_p8 = scmp.lt.u32.totalorder %s1088_s26, %s1538_s3 }
 0x1a0   : > { %p1090_p0 = pnand %p1089_p6, %p1641_p2 }
 0x1a1   : > { %p1095_p7 = por %p1094_p4, %p1093_p12 }
 0x1a2   : > { %p1091_p1 = pneg %p1090_p0 }
 0x1a3   : > { %p1097_p10 = por %p1096_p8, %p1095_p7 }
 0x1a5   : > { %p1098_p11 = pnand %p1097_p10, %p1091_p1 }
 0x1a7   : > { %1101 = shalt.err (!%p1098_p11)
}
 0x1a8   : > { %874 = dma.vmem_to_hbm [thread:$0]  (%p1641_p2), %s1540_s2, 16, %s1538_s3, %s1549_s4  }
 0x1a9   : > { %s1102_s23 = scalar_lea.vmem %s1547_s21, 16  ;;  %s1210_s12 = smov [#allocation14]  }
 0x1aa   : > { %p1103_p3 = scmp.ne.s32.totalorder %s1547_s21, %s1102_s23  ;;  %s1106_s17 = sshll.u32 %s1210_s12, 4  ;;  %s1107_s17 = int_to_ptr.vmem [resolvable:$false] %s1106_s17 }
 0x1ab   : > { %s1108_s20 = scalar_lea.vmem %s1107_s17, 32  ;;  %p1109_p13 = scmp.lt.s32.totalorder %s1547_s21, %s1107_s17 }
 0x1ac   : > { %p1104_p5 = pnand %p1103_p3, %p1641_p2  ;;  %p1110_p6 = scmp.lt.s32.totalorder %s1108_s20, %s1102_s23 }
 0x1ae   : > { %p1105_p9 = pneg %p1104_p5  ;;  %p1111_p0 = por %p1110_p6, %p1109_p13 }
 0x1b0   : > { %p1112_p1 = pnand %p1111_p0, %p1105_p9 }
 0x1b2   : > { %1115 = shalt.err (!%p1112_p1)
}
 0x1b3   : > { %s1116_s2 = scalar_lea.hbm %s1545_s14, 16  ;;  %s1120_s30 = scalar_lea.hbm %s1626_s7, 32 }
 0x1b4   : > { %p1117_p12 = scmp.ne.s32.totalorder %s1545_s14, %s1116_s2  ;;  %p1121_p8 = scmp.lt.u32.totalorder %s1545_s14, %s1626_s7 }
 0x1b5   : > { %p1122_p10 = scmp.lt.u32.totalorder %s1120_s30, %s1116_s2  ;;  %p1124_p3 = scmp.lt.u32.totalorder %s1116_s2, %s1545_s14 }
 0x1b6   : > { %p1118_p4 = pnand %p1117_p12, %p1641_p2 }
 0x1b7   : > { %p1123_p11 = por %p1122_p10, %p1121_p8 }
 0x1b8   : > { %p1119_p7 = pneg %p1118_p4 }
 0x1b9   : > { %p1125_p5 = por %p1124_p3, %p1123_p11 }
 0x1bb   : > { %p1126_p9 = pnand %p1125_p5, %p1119_p7 }
 0x1bd   : > { %1129 = shalt.err (!%p1126_p9)
}
 0x1be   : > { %875 = dma.vmem_to_hbm [thread:$0]  (%p1641_p2), %s1547_s21, 16, %s1545_s14, %s1549_s4  }
 0x1bf PF: > { %s660_s26 = sand.u32 1, %s1174_s0   ;;  %p1642_p13 = scmp.ne.s32.totalorder %s1637_s29, 0 }
 0x1c0   : > { %p1643_p6 = scmp.ge.s32.totalorder %s1194_s19, 2  ;;  %s661_s8 = scalar_lea.sflag [#allocation7], %s660_s26 }
 0x1c2   : > { %p880_p0 = pnand %p1643_p6, %p1642_p13 }
 0x1c4   : > { %1165 = dma.done.wait (!%p880_p0), %s661_s8, 64  }
 0x1c5   : > { %1167 = vsyncadd (!%p880_p0), %s661_s8, 4294967232  ;;  %s1644_s24 = sadd.s32 4294967294, %s1194_s19  }
 0x1c6   : > { %s669_s13 = sand.u32 1, %s1644_s24  }
 0x1c7   : > { %s670_s25 = scalar_lea.sflag [#allocation13], %s669_s13 }
 0x1c8   : > { %1169 = dma.done.wait (!%p880_p0), %s670_s25, 32  }
 0x1c9   : > { %1171 = vsyncadd (!%p880_p0), %s670_s25, 4294967264  ;;  %s38_s19 = sadd.s32 1, %s1194_s19   ;;  %s1645_s0 = smov %s1178_s1 }
 0x1ca   : > { %p35_p2 = scmp.ge.s32.totalorder %s38_s19, 4   ;;  %s1646_s1 = smov %s1182_s16 }
 0x1cb   : > { %s1647_s16 = smov %s1328_s28  ;;  %s1648_s17 = smov %s1190_s18 }
 0x1cc   : > { %s1649_s18 = smov %s1651_s22  ;;  %37 = sbr.rel (!%p35_p2) target bundleno = 33 (0x21), region = 164 }
 0x1d3   :  { %682 = vsyncpa [#allocation6], 1 }
 0x1d4   :  { %684 = vsyncpa [#allocation6 + $0x1], 1 }
 0x1d5   :  { %685 = vsyncpa [#allocation10], 1 }
 0x1d6   :  { %687 = vsyncpa [#allocation10 + $0x1], 1 }
 0x1d7   :  { %688 = vsyncpa [#allocation7], 1 }
 0x1d8   :  { %690 = vsyncpa [#allocation7 + $0x1], 1 }
 0x1d9   :  { %691 = vsyncpa [#allocation13], 1 }
 0x1da   :  { %693 = vsyncpa [#allocation13 + $0x1], 1 }

</bundles_post_ra>
